<compile_context>
chip_gen: v6e
topology: v6e:2x2x1
jax: 0.10.0
libtpu: 0.0.40
codegen_flags: <defaults>
</compile_context>

<pallas_src>
import functools

import jax
import jax.numpy as jnp
from jax import lax
from jax.experimental import pallas as pl
from jax.experimental.pallas import tpu as pltpu


def _ls_ce_kernel(n_ref, x_ref, t_ref, o_ref, m_sc, l_sc, w_sc, *,
                  smoothing, num_classes, tile_rows, tile_cols):
    i = pl.program_id(0)              # row-tile index   ("parallel")
    j = pl.program_id(1)              # class-tile index ("arbitrary")
    last_j = pl.num_programs(1) - 1

    @pl.when(j == 0)
    def _():
        m_sc[...] = jnp.full_like(m_sc, -jnp.inf)
        l_sc[...] = jnp.zeros_like(l_sc)
        w_sc[...] = jnp.zeros_like(w_sc)

    # NOTE: on v6e/v7x a bf16 exp (EUP) path would halve the VMEM working set;
    # kept f32 here for accuracy parity with the reference.
    x = x_ref[...].astype(jnp.float32)        # (TR, TC)
    t = t_ref[...]                            # (TR, 1) int32
    tr, tc = x.shape

    # Global class index per lane; mask lanes past the true class count
    # (the ragged last class tile reads garbage there).
    col = j * tile_cols + lax.broadcasted_iota(jnp.int32, (tr, tc), 1)
    valid = col < num_classes
    x_lse = jnp.where(valid, x, -jnp.inf)     # for max / sum-exp
    x_zero = jnp.where(valid, x, 0.0)         # for weighted sum (kills NaN*0)

    # --- online (flash-style) logsumexp accumulation ---
    m_prev = m_sc[...]
    m_new = jnp.maximum(m_prev, jnp.max(x_lse, axis=-1, keepdims=True))
    alpha = jnp.exp(m_prev - m_new)
    l_sc[...] = alpha * l_sc[...] + jnp.sum(jnp.exp(x_lse - m_new),
                                            axis=-1, keepdims=True)
    m_sc[...] = m_new

    # --- fused weighted reduction: (1-s)*x[target] + (s/C)*sum(x) ---
    base = smoothing / num_classes
    w = jnp.where(col == t, base + (1.0 - smoothing), base)
    w = jnp.where(valid, w, 0.0)
    w_sc[...] += jnp.sum(w * x_zero, axis=-1, keepdims=True)

    @pl.when(j == last_j)
    def _():
        lse = m_sc[...] + jnp.log(l_sc[...])
        loss = lse - w_sc[...]                                    # (TR, 1)
        # Mask rows past the true batch size (ragged last row tile).  Keep the
        # mask BEFORE the partial sum; where selects, so NaN/Inf in garbage
        # rows cannot propagate.
        row = i * tile_rows + lax.broadcasted_iota(jnp.int32, (tr, 1), 0)
        loss = jnp.where(row < n_ref[0], loss, 0.0)
        # Lane-dense (unmasked) store; pre-divide by 8*128 so the wrapper can
        # reduce the whole partials array contiguously.
        partial = jnp.sum(loss) * (1.0 / (8.0 * 128.0))
        o_ref[...] = jnp.broadcast_to(partial, o_ref.shape).astype(jnp.float32)


def _round_up(a, b):
    return ((a + b - 1) // b) * b


def label_smoothing_cross_entropy(inputs, targets, smoothing=0.1,
                                  tile_rows=None, tile_cols=None):
    """inputs: (N, C) float logits, targets: (N,) int class ids -> scalar f32."""
    n, c = inputs.shape
    itemsize = jnp.dtype(inputs.dtype).itemsize
    sub = 16 if itemsize == 2 else 8          # sublane tile (bf16:16, f32:8)

    # ---- class-dim tiling (online LSE kicks in for large vocabularies) ----
    if tile_cols is None:
        tile_cols = c if c <= 8192 else 2048  # 2048 lanes per class tile
    assert tile_cols == c or tile_cols % 128 == 0
    num_class_tiles = pl.cdiv(c, tile_cols)

    # ---- row-dim tiling ----
    # VMEM lanes a logits block actually occupies (last dim pads to 128).
    lanes = _round_up(min(tile_cols, c), 128)
    if tile_rows is None:
        budget = 2 << 20                      # ~2 MiB of logits per block:
                                              # x2 (double-buffer) + ~4x f32
                                              # working set stays well under
                                              # the 48 MiB limit below (v7x has
                                              # 64 MiB/TC; v5e's default scoped
                                              # limit is only 16 MiB, hence the
                                              # explicit limit).
        tr = budget // (lanes * itemsize)
        tr = min(tr, _round_up(pl.cdiv(n, 4), sub))   # >=4 row tiles so both
                                                      # v7x TensorCores get work
        tr = min(tr, _round_up(n, sub))
        tile_rows = max(sub, (tr // sub) * sub)
    assert tile_rows % sub == 0
    num_row_tiles = pl.cdiv(n, tile_rows)

    # No jnp.pad of the logits: Pallas handles ragged boundary blocks and the
    # in-kernel masks make the garbage rows/columns harmless.
    t2d = targets.astype(jnp.int32).reshape(n, 1)
    n_valid = jnp.array([n], dtype=jnp.int32)         # scalar-prefetch (SMEM)

    kernel = functools.partial(
        _ls_ce_kernel,
        smoothing=float(smoothing),
        num_classes=c,
        tile_rows=tile_rows,
        tile_cols=tile_cols,
    )

    partials = pl.pallas_call(
        kernel,
        out_shape=jax.ShapeDtypeStruct((num_row_tiles, 8, 128), jnp.float32),
        grid_spec=pltpu.PrefetchScalarGridSpec(
            num_scalar_prefetch=1,
            grid=(num_row_tiles, num_class_tiles),
            in_specs=[
                pl.BlockSpec((tile_rows, tile_cols),
                             lambda i, j, n_ref: (i, j)),
                # TODO(synk): targets stay a (tile_rows, 1) VMEM block (lane-
                # padded); a lane-dense/SMEM layout needs an in-kernel
                # lane->sublane relayout that is not worth the lowering risk.
                pl.BlockSpec((tile_rows, 1),
                             lambda i, j, n_ref: (i, 0)),
            ],
            out_specs=pl.BlockSpec((1, 8, 128),
                                   lambda i, j, n_ref: (i, 0, 0)),
            scratch_shapes=[
                pltpu.VMEM((tile_rows, 1), jnp.float32),   # running max
                pltpu.VMEM((tile_rows, 1), jnp.float32),   # running sum-exp
                pltpu.VMEM((tile_rows, 1), jnp.float32),   # running weighted sum
            ],
        ),
        compiler_params=pltpu.CompilerParams(
            dimension_semantics=("parallel", "arbitrary"),
            vmem_limit_bytes=48 * 1024 * 1024,
        ),
        cost_estimate=pl.CostEstimate(
            flops=7 * n * c,
            transcendentals=n * c,
            bytes_accessed=n * c * itemsize + n * 4
            + num_row_tiles * 8 * 128 * 4,
        ),
    )(n_valid, inputs, t2d)

    # Each (8,128) block holds partial/1024 broadcast -> one contiguous sum.
    return jnp.sum(partials) / jnp.float32(n)


def _reference(inputs, targets, smoothing=0.1):
    log_probs = jax.nn.log_softmax(inputs.astype(jnp.float32), axis=-1)
    nll = -jnp.take_along_axis(log_probs, targets[:, None], axis=-1)[:, 0]
    smooth = -jnp.mean(log_probs, axis=-1)
    return jnp.mean((1.0 - smoothing) * nll + smoothing * smooth)


if __name__ == "__main__":
    key = jax.random.PRNGKey(0)
    k1, k2, k3, k4 = jax.random.split(key, 4)

    # Case 1: small vocab, single class tile, ragged last row tile
    # (N=20 is not a multiple of tile_rows=8) -- no wrapper padding anywhere.
    N1, C1 = 20, 32
    logits1 = jax.random.normal(k1, (N1, C1), dtype=jnp.float32)
    targets1 = jax.random.randint(k2, (N1,), 0, C1, dtype=jnp.int32)
    loss1 = label_smoothing_cross_entropy(logits1, targets1, smoothing=0.1,
                                          tile_rows=8)
    loss1 = jax.block_until_ready(loss1)
    ref1 = _reference(logits1, targets1, smoothing=0.1)
    assert jnp.allclose(loss1, ref1, atol=1e-5, rtol=1e-5), (loss1, ref1)

    # Same inputs through the default tiling heuristic.
    loss1b = jax.block_until_ready(
        label_smoothing_cross_entropy(logits1, targets1, smoothing=0.1))
    assert jnp.allclose(loss1b, ref1, atol=1e-5, rtol=1e-5), (loss1b, ref1)

    # Case 2: class-dim tiling (online LSE) with a ragged last class tile
    # (C=300 over 128-wide class tiles) plus ragged row tiles.
    N2, C2 = 20, 300
    logits2 = jax.random.normal(k3, (N2, C2), dtype=jnp.float32)
    targets2 = jax.random.randint(k4, (N2,), 0, C2, dtype=jnp.int32)
    loss2 = label_smoothing_cross_entropy(logits2, targets2, smoothing=0.1,
                                          tile_rows=8, tile_cols=128)
    loss2 = jax.block_until_ready(loss2)
    ref2 = _reference(logits2, targets2, smoothing=0.1)
    assert jnp.allclose(loss2, ref2, atol=1e-5, rtol=1e-5), (loss2, ref2)

    print("KERNEL_OK")
</pallas_src>

<mosaic_0001>
module attributes {stable_mosaic.version = 11 : i64} {
  func.func @_ls_ce_kernel(%arg0: i32, %arg1: i32, %arg2: memref<1xi32, #tpu.memory_space<smem>>, %arg3: memref<8x32xf32, #tpu.memory_space<vmem>>, %arg4: memref<8x1xi32, #tpu.memory_space<vmem>>, %arg5: memref<1x8x128xf32, #tpu.memory_space<vmem>>, %arg6: memref<8x1xf32, #tpu.memory_space<vmem>>, %arg7: memref<8x1xf32, #tpu.memory_space<vmem>>, %arg8: memref<8x1xf32, #tpu.memory_space<vmem>>) attributes {dimension_semantics = [#tpu.dimension_semantics<parallel>, #tpu.dimension_semantics<arbitrary>], iteration_bounds = array<i64: 3, 1>, scalar_prefetch = 1 : i64, scratch_operands = 3 : i64, tpu.core_type = #tpu.core_type<tc>, window_params = [{transform_indices = @transform_0, window_bounds = array<i64: 8, 32>}, {transform_indices = @transform_1, window_bounds = array<i64: 8, 1>}, {transform_indices = @transform_2, window_bounds = array<i64: 1, 8, 128>}]} {
    %c0_i32 = arith.constant 0 : i32
    %0 = arith.cmpi eq, %arg1, %c0_i32 : i32
    %1 = arith.extui %0 : i1 to i32
    %c0_i32_0 = arith.constant 0 : i32
    %2 = arith.cmpi ne, %1, %c0_i32_0 : i32
    scf.if %2 {
      %cst_26 = arith.constant 0xFF800000 : f32
      %47 = vector.broadcast %cst_26 : f32 to vector<8x1xf32>
      %c0_27 = arith.constant 0 : index
      %c0_28 = arith.constant 0 : index
      %48 = vector.load %arg6[%c0_27, %c0_28] : memref<8x1xf32, #tpu.memory_space<vmem>>, vector<8x1xf32>
      tpu.vector_store %arg6[%c0_27, %c0_28], %47 {strides = array<i32>} : memref<8x1xf32, #tpu.memory_space<vmem>>, vector<8x1xf32>,
      %cst_29 = arith.constant 0.000000e+00 : f32
      %49 = vector.broadcast %cst_29 : f32 to vector<8x1xf32>
      %c0_30 = arith.constant 0 : index
      %c0_31 = arith.constant 0 : index
      %50 = vector.load %arg7[%c0_30, %c0_31] : memref<8x1xf32, #tpu.memory_space<vmem>>, vector<8x1xf32>
      tpu.vector_store %arg7[%c0_30, %c0_31], %49 {strides = array<i32>} : memref<8x1xf32, #tpu.memory_space<vmem>>, vector<8x1xf32>,
      %cst_32 = arith.constant 0.000000e+00 : f32
      %51 = vector.broadcast %cst_32 : f32 to vector<8x1xf32>
      %c0_33 = arith.constant 0 : index
      %c0_34 = arith.constant 0 : index
      %52 = vector.load %arg8[%c0_33, %c0_34] : memref<8x1xf32, #tpu.memory_space<vmem>>, vector<8x1xf32>
      tpu.vector_store %arg8[%c0_33, %c0_34], %51 {strides = array<i32>} : memref<8x1xf32, #tpu.memory_space<vmem>>, vector<8x1xf32>,
    } else {
    }
    %c0 = arith.constant 0 : index
    %c0_1 = arith.constant 0 : index
    %3 = vector.load %arg3[%c0, %c0_1] : memref<8x32xf32, #tpu.memory_space<vmem>>, vector<8x32xf32>
    %c0_2 = arith.constant 0 : index
    %c0_3 = arith.constant 0 : index
    %4 = vector.load %arg4[%c0_2, %c0_3] : memref<8x1xi32, #tpu.memory_space<vmem>>, vector<8x1xi32>
    %c32_i32 = arith.constant 32 : i32
    %5 = arith.muli %arg1, %c32_i32 : i32
    %6 = tpu.iota {dimensions = array<i32: 1>} : vector<8x32xi32>
    %7 = vector.broadcast %5 : i32 to vector<8x32xi32>
    %8 = arith.addi %7, %6 : vector<8x32xi32>
    %c32_i32_4 = arith.constant 32 : i32
    %9 = vector.broadcast %c32_i32_4 : i32 to vector<8x32xi32>
    %10 = arith.cmpi slt, %8, %9 : vector<8x32xi32>
    %cst = arith.constant 0xFF800000 : f32
    %11 = vector.broadcast %cst : f32 to vector<8x32xf32>
    %12 = arith.select %10, %3, %11 : vector<8x32xi1>, vector<8x32xf32>
    %cst_5 = arith.constant 0.000000e+00 : f32
    %13 = vector.broadcast %cst_5 : f32 to vector<8x32xf32>
    %14 = arith.select %10, %3, %13 : vector<8x32xi1>, vector<8x32xf32>
    %c0_6 = arith.constant 0 : index
    %c0_7 = arith.constant 0 : index
    %15 = vector.load %arg6[%c0_6, %c0_7] : memref<8x1xf32, #tpu.memory_space<vmem>>, vector<8x1xf32>
    %cst_8 = arith.constant dense<0xFF800000> : vector<8xf32>
    %16 = vector.multi_reduction <maximumf>, %12, %cst_8 [1] : vector<8x32xf32> to vector<8xf32>
    %17 = vector.shape_cast %16 : vector<8xf32> to vector<8x1xf32>
    %18 = arith.maximumf %15, %17 : vector<8x1xf32>
    %19 = arith.subf %15, %18 : vector<8x1xf32>
    %20 = math.exp %19 : vector<8x1xf32>
    %c0_9 = arith.constant 0 : index
    %c0_10 = arith.constant 0 : index
    %21 = vector.load %arg7[%c0_9, %c0_10] : memref<8x1xf32, #tpu.memory_space<vmem>>, vector<8x1xf32>
    %22 = arith.mulf %20, %21 : vector<8x1xf32>
    %23 = vector.broadcast %18 : vector<8x1xf32> to vector<8x32xf32>
    %24 = arith.subf %12, %23 : vector<8x32xf32>
    %25 = math.exp %24 : vector<8x32xf32>
    %cst_11 = arith.constant dense<0.000000e+00> : vector<8xf32>
    %26 = vector.multi_reduction <add>, %25, %cst_11 [1] : vector<8x32xf32> to vector<8xf32>
    %27 = vector.shape_cast %26 : vector<8xf32> to vector<8x1xf32>
    %28 = arith.addf %22, %27 : vector<8x1xf32>
    %c0_12 = arith.constant 0 : index
    %c0_13 = arith.constant 0 : index
    %29 = vector.load %arg7[%c0_12, %c0_13] : memref<8x1xf32, #tpu.memory_space<vmem>>, vector<8x1xf32>
    tpu.vector_store %arg7[%c0_12, %c0_13], %28 {strides = array<i32>} : memref<8x1xf32, #tpu.memory_space<vmem>>, vector<8x1xf32>,
    %c0_14 = arith.constant 0 : index
    %c0_15 = arith.constant 0 : index
    %30 = vector.load %arg6[%c0_14, %c0_15] : memref<8x1xf32, #tpu.memory_space<vmem>>, vector<8x1xf32>
    tpu.vector_store %arg6[%c0_14, %c0_15], %18 {strides = array<i32>} : memref<8x1xf32, #tpu.memory_space<vmem>>, vector<8x1xf32>,
    %31 = vector.broadcast %4 : vector<8x1xi32> to vector<8x32xi32>
    %32 = arith.cmpi eq, %8, %31 : vector<8x32xi32>
    %cst_16 = arith.constant 0.903124988 : f32
    %cst_17 = arith.constant 3.125000e-03 : f32
    %33 = vector.broadcast %cst_16 : f32 to vector<8x32xf32>
    %34 = vector.broadcast %cst_17 : f32 to vector<8x32xf32>
    %35 = arith.select %32, %33, %34 : vector<8x32xi1>, vector<8x32xf32>
    %cst_18 = arith.constant 0.000000e+00 : f32
    %36 = vector.broadcast %cst_18 : f32 to vector<8x32xf32>
    %37 = arith.select %10, %35, %36 : vector<8x32xi1>, vector<8x32xf32>
    %c0_19 = arith.constant 0 : index
    %c0_20 = arith.constant 0 : index
    %38 = vector.load %arg8[%c0_19, %c0_20] : memref<8x1xf32, #tpu.memory_space<vmem>>, vector<8x1xf32>
    %39 = arith.mulf %37, %14 : vector<8x32xf32>
    %cst_21 = arith.constant dense<0.000000e+00> : vector<8xf32>
    %40 = vector.multi_reduction <add>, %39, %cst_21 [1] : vector<8x32xf32> to vector<8xf32>
    %41 = vector.shape_cast %40 : vector<8xf32> to vector<8x1xf32>
    %42 = arith.addf %38, %41 : vector<8x1xf32>
    %c0_22 = arith.constant 0 : index
    %c0_23 = arith.constant 0 : index
    %43 = vector.load %arg8[%c0_22, %c0_23] : memref<8x1xf32, #tpu.memory_space<vmem>>, vector<8x1xf32>
    tpu.vector_store %arg8[%c0_22, %c0_23], %42 {strides = array<i32>} : memref<8x1xf32, #tpu.memory_space<vmem>>, vector<8x1xf32>,
    %c0_i32_24 = arith.constant 0 : i32
    %44 = arith.cmpi eq, %arg1, %c0_i32_24 : i32
    %45 = arith.extui %44 : i1 to i32
    %c0_i32_25 = arith.constant 0 : i32
    %46 = arith.cmpi ne, %45, %c0_i32_25 : i32
    scf.if %46 {
      %c0_26 = arith.constant 0 : index
      %c0_27 = arith.constant 0 : index
      %47 = vector.load %arg6[%c0_26, %c0_27] : memref<8x1xf32, #tpu.memory_space<vmem>>, vector<8x1xf32>
      %c0_28 = arith.constant 0 : index
      %c0_29 = arith.constant 0 : index
      %48 = vector.load %arg7[%c0_28, %c0_29] : memref<8x1xf32, #tpu.memory_space<vmem>>, vector<8x1xf32>
      %49 = math.log %48 : vector<8x1xf32>
      %50 = arith.addf %47, %49 : vector<8x1xf32>
      %c0_30 = arith.constant 0 : index
      %c0_31 = arith.constant 0 : index
      %51 = vector.load %arg8[%c0_30, %c0_31] : memref<8x1xf32, #tpu.memory_space<vmem>>, vector<8x1xf32>
      %52 = arith.subf %50, %51 : vector<8x1xf32>
      %c8_i32 = arith.constant 8 : i32
      %53 = arith.muli %arg0, %c8_i32 : i32
      %54 = tpu.iota {dimensions = array<i32: 0>} : vector<8x1xi32>
      %55 = vector.broadcast %53 : i32 to vector<8x1xi32>
      %56 = arith.addi %55, %54 : vector<8x1xi32>
      %c0_32 = arith.constant 0 : index
      %57 = memref.load %arg2[%c0_32] : memref<1xi32, #tpu.memory_space<smem>>
      %58 = vector.broadcast %57 : i32 to vector<8x1xi32>
      %59 = arith.cmpi slt, %56, %58 : vector<8x1xi32>
      %cst_33 = arith.constant 0.000000e+00 : f32
      %60 = vector.broadcast %cst_33 : f32 to vector<8x1xf32>
      %61 = arith.select %59, %52, %60 : vector<8x1xi1>, vector<8x1xf32>
      %62 = vector.shape_cast %61 : vector<8x1xf32> to vector<1x8x1xf32>
      %cst_34 = arith.constant dense<0.000000e+00> : vector<1xf32>
      %63 = vector.multi_reduction <add>, %62, %cst_34 [1, 2] : vector<1x8x1xf32> to vector<1xf32>
      %64 = vector.shape_cast %63 : vector<1xf32> to vector<1x1x1xf32>
      %65 = vector.extract %64[0, 0, 0] : f32 from vector<1x1x1xf32>
      %cst_35 = arith.constant 9.765625E-4 : f32
      %66 = arith.mulf %65, %cst_35 : f32
      %67 = vector.broadcast %66 : f32 to vector<1x8x128xf32>
      %c0_36 = arith.constant 0 : index
      %c0_37 = arith.constant 0 : index
      %c0_38 = arith.constant 0 : index
      %68 = vector.load %arg5[%c0_36, %c0_37, %c0_38] : memref<1x8x128xf32, #tpu.memory_space<vmem>>, vector<1x8x128xf32>
      tpu.vector_store %arg5[%c0_36, %c0_37, %c0_38], %67 {strides = array<i32>} : memref<1x8x128xf32, #tpu.memory_space<vmem>>, vector<1x8x128xf32>,
    } else {
    }
    return
  }
  func.func @transform_0(%arg0: i32, %arg1: i32, %arg2: memref<1xi32, #tpu.memory_space<smem>>) -> (i32, i32) {
    %c0_i32 = arith.constant 0 : i32
    return %arg0, %arg1 : i32, i32
  }
  func.func @transform_1(%arg0: i32, %arg1: i32, %arg2: memref<1xi32, #tpu.memory_space<smem>>) -> (i32, i32) {
    %c0_i32 = arith.constant 0 : i32
    %c0_i32_0 = arith.constant 0 : i32
    return %arg0, %c0_i32 : i32, i32
  }
  func.func @transform_2(%arg0: i32, %arg1: i32, %arg2: memref<1xi32, #tpu.memory_space<smem>>) -> (i32, i32, i32) {
    %c0_i32 = arith.constant 0 : i32
    %c0_i32_0 = arith.constant 0 : i32
    %c0_i32_1 = arith.constant 0 : i32
    return %arg0, %c0_i32, %c0_i32_0 : i32, i32, i32
  }
}

</mosaic_0001>

<bundles_post_ra>
// kernel: tpu_custom_call.1
= control target key start
LH: loop header
LB: loop body
LE: loop exit
PB: predicated region body
PF: predicated region fallthrough
CT: control target
= control target key end

     0   :  { %s676_s0 = inlined_call_operand.<no memory space> [shape: s32[1], index: 0, kind: input, shape index: {}]   ;;  %s677_s1 = inlined_call_operand.vmem [shape: f32[20,32], index: 1, kind: input, shape index: {}]   ;;  %s678_s2 = inlined_call_operand.vmem [shape: s32[20,1], index: 2, kind: input, shape index: {}]   ;;  %s679_s3 = inlined_call_operand.hbm [shape: f32[3,8,128], index: 3, kind: output, shape index: {}]  }
   0x1   :  { %8 = sst [smem:[#allocation6]] %s676_s0 }
   0x2   :  { %9 = vsyncpa [#allocation8], 0 }
   0x3   :  { %11 = vsyncpa [#allocation8 + $0x1], 0  ;;  %s554_s14 = smov 0   ;;  %s556_s15 = smov 0  }
   0x4   :  { %s558_s16 = smov 0   ;;  %s560_s17 = smov 0  }
   0x5   :  { %s562_s18 = smov 0   ;;  %s564_s19 = smov 0  }
   0x6 LB: > { %s366_s0 = sadd.s32 4294967295, %s524_s19   ;;  %s367_s20 = sadd.s32 4294967294, %s524_s19   ;;  %s524_s19 = sphi %s564_s19, %s17_s19   ;;  %s520_s18 = sphi %s562_s18, %s686_s18   ;;  %s516_s17 = sphi %s560_s17, %s685_s17   ;;  %s512_s16 = sphi %s558_s16, %s684_s16   ;;  %s508_s15 = sphi %s556_s15, %s683_s15   ;;  %s504_s14 = sphi %s554_s14, %s682_s14  }
   0x7   : > { %s29_s21 = sadd.s32 1, %s520_s18  ;;  %s90_s22 = sadd.s32 1, %s512_s16 }
   0x8   : > { %p31_p0 = scmp.ge.s32.totalorder %s29_s21, 3  ;;  %p100_p1 = scmp.ne.s32.totalorder %s512_s16, %s508_s15 }
   0x9   : > { %p101_p2 = scmp.eq.s32.totalorder %s366_s0, 2  ;;  %p106_p3 = scmp.ne.s32.totalorder %s508_s15, %s504_s14 }
   0xa   : > { %s688_s21 = smov (%p31_p0, %s29_s21), 0  ;;  %p107_p5 = scmp.eq.s32.totalorder %s367_s20, 2 }
   0xb   : > { %p594_p4 = por %p101_p2, %p100_p1  ;;  %s87_s24 = ssub.s32 %s520_s18, %s688_s21 }
   0xc   : > { %p370_p6 = scmp.ge.s32.totalorder %s524_s19, 1  ;;  %p88_p7 = scmp.eq.s32.totalorder %s87_s24, 0 }
   0xd   : > { %p601_p8 = por %p107_p5, %p106_p3  ;;  %p142_p9 = scmp.lt.s32.totalorder %s524_s19, 4 }
   0xe   : > { %s607_s26 = scalar_select %p88_p7, %s512_s16, %s90_s22  }
   0xf   : > { %p143_p10 = pnand %p370_p6, %p142_p9 }
  0x10   : > { %p170_p11 = scmp.lt.s32.totalorder (!%p143_p10), %s516_s17, 2  ;;  %s253_s8 = sld [smem:[#allocation6]] (!%p143_p10) }
  0x11   : > { %146 = sbr.rel (%p143_p10) target bundleno = 698 (0x2ba), region = 28  ;;  %s374_s9 = sshll.u32 (!%p143_p10), %s516_s17, 3 }
  0x12   : > { %s167_s10 = sand.u32 (!%p143_p10), 1, %s508_s15   ;;  %s376_s0 = sshll.u32 (!%p143_p10), %s516_s17, 7 }
  0x13   : > { %s371_s11 = sshll.u32 (!%p143_p10), %s167_s10, 3  ;;  %s271_s29 = scalar_lea.sflag (!%p143_p10), [#allocation8], %s167_s10 }
  0x14   : > { %s169_s12 = scalar_lea.vmem (!%p143_p10), [#allocation7], %s371_s11 }
  0x15   : > { %s284_s13 = sshll.u32 (!%p143_p10), %s169_s12, 4  ;;  %s285_s13 = int_to_ptr.vmem [resolvable:$true] %s284_s13 }
  0x16   : > { %v192_v0 = vlaneseq  ;;  %vm185_vm0 = vcmask 7168   ;;  %v526_v1 = vmov -inf   ;;  %s171_s27 = scalar_select %p170_p11, %s516_s17, 2  ;;  %vm200_vm2 = vcmask 261120  }
  0x17   : > { %186 = vst.msk [vmem:[#allocation2] sm:$0xff] %vm185_vm0, %v526_v1  ;;  %v527_v6 = vmov 0   ;;  %v528_v8 = vmov 0.0   ;;  %v529_v17 = vmov 0.003125   ;;  %v251_v36 = vstv %s374_s9  ;;  %s448_s30 = scalar_lea.vmem %s285_s13, 128 }
  0x18   : > { %v193_v2 = vand.u32 127, %v192_v0  ;;  %s372_s28 = sshll.u32 %s171_s27, 3  ;;  %440 = vset.pattern.permute.xlu0 %v527_v6  ;;  %441 = vset.pattern.permute.xlu1 %v527_v6  ;;  %187 = vst.msk [vmem:[#allocation3] sm:$0xff] %vm185_vm0, %v528_v8  ;;  %188 = vst.msk [vmem:[#allocation4] sm:$0xff] %vm185_vm0, %v528_v8  ;;  %v250_v35 = vshrl.u32 %v192_v0, 7  ;;  %v254_v40 = vstv %s253_s8  ;;  %p449_p12 = scmp.ne.s32.totalorder %s285_s13, %s448_s30 }
  0x19   : > { %s176_s4 = scalar_lea.vmem %s677_s1, %s372_s28  ;;  %s180_s7 = scalar_lea.vmem %s678_s2, %s372_s28 }
  0x1a   : > { %vm196_vm1 = vcmp.lt.s32.totalorder %v193_v2, 32  ;;  %v189_v3 = vld [vmem:[%s176_s4] sm:$0xff]  ;;  %v252_v38 = vadd.s32 %v251_v36, %v250_v35  ;;  %s636_s28 = scalar_lea.hbm %s679_s3, %s376_s0  ;;  %p450_p13 = pnand %p449_p12, %p594_p4 }
  0x1b   : > { %v197_v4 = vsel %vm196_vm1, %v189_v3, -inf  ;;  %v190_v7 = vld [vmem:[%s180_s7] sm:$0xff]  ;;  %v198_v19 = vsel %vm196_vm1, %v189_v3, 0.0  ;;  %s530_s4 = smov [#allocation7]  }
  0x1c   : > { %v201_v5 = vsel %vm200_vm2, %v197_v4, -inf  ;;  %226 = vperm.xlu1 %441, %v190_v7   ;;  %vm255_vm4 = vcmp.lt.s32.totalorder %v252_v38, %v254_v40  ;;  %p451_p0 = pneg %p450_p13  ;;  %s452_s5 = sshll.u32 %s530_s4, 4  ;;  %s453_s5 = int_to_ptr.vmem [resolvable:$false] %s452_s5 }
  0x1d   : > { %202 = vmax.xlane.f32.xlu0 %v201_v5  ;;  %s454_s17 = scalar_lea.vmem %s453_s5, 256  ;;  %p455_p1 = scmp.lt.s32.totalorder %s285_s13, %s453_s5 }
  0x1e   : > { %v199_v9 = vld [vmem:[#allocation2] sm:$0xff]  ;;  %p456_p2 = scmp.lt.s32.totalorder %s454_s17, %s448_s30 }
  0x1f   : > { %v208_v27 = vld [vmem:[#allocation3] sm:$0xff]  ;;  %v231_v31 = vld [vmem:[#allocation4] sm:$0xff] }
  0x20   : > { %p457_p3 = por %p456_p2, %p455_p1 }
  0x22   : > { %p458_p5 = pnand %p457_p3, %p451_p0 }
  0x97   : > { %v227_v16 = vpop.permute.xlu1 %226 }
  0x98   : > { %vm228_vm3 = vcmp.eq.s32.totalorder %v193_v2, %v227_v16 }
  0x99   : > { %v229_v18 = vsel %vm228_vm3, 0.903125, %v529_v17 }
  0x9a   : > { %v230_v20 = vsel %vm196_vm1, %v229_v18, 0.0 }
  0x9b   : > { %v232_v21 = vmul.f32 %v230_v20, %v198_v19 }
  0x9d   : > { %v233_v24 = vsel %vm200_vm2, %v232_v21, 0.0 }
  0xa6   : > { %v203_v10 = vpop.xlane.xlu0 %202 }
  0xa7   : > { %v204_v11 = vmax.f32 %v199_v9, %v203_v10 }
  0xa9   : > { %v205_v12 = vsub.f32 %v199_v9, %v204_v11  ;;  %224 = vst.msk [vmem:[#allocation2] sm:$0xff] %vm185_vm0, %v204_v11  ;;  %212 = vperm.xlu0 %440, %v204_v11  }
  0xab   : > { %v206_v25 = vmul.f32 1.442695, %v205_v12 }
  0xb0   : > { %v241_v41 = vld [vmem:[#allocation2] sm:$0xff] }
 0x124   : > { %v213_v13 = vpop.permute.xlu0 %212 }
 0x125   : > { %v215_v14 = vsub.f32 %v197_v4, %v213_v13 }
 0x127   : > { %v216_v15 = vmul.f32 1.442695, %v215_v14 }
 0x129   : > { %442 = vpow2.f32 %v216_v15 }
 0x12a   : > { %444 = vpow2.f32 %v206_v25 }
 0x136   : > { %v443_v22 = vpop.eup %442 }
 0x137   : > { %v218_v23 = vsel %vm200_vm2, %v443_v22, 0.0  ;;  %v445_v26 = vpop.eup %444 }
 0x138   : > { %219 = vadd.xlane.f32.xlu1 %v218_v23  ;;  %v209_v28 = vmul.f32 %v445_v26, %v208_v27 }
 0x13c   : > { %234 = vadd.xlane.f32.xlu1 %v233_v24 }
 0x1c1   : > { %v220_v29 = vpop.xlane.xlu1 %219 }
 0x1c2   : > { %v221_v30 = vadd.f32 %v220_v29, %v209_v28 }
 0x1c4   : > { %223 = vst.msk [vmem:[#allocation3] sm:$0xff] %vm185_vm0, %v221_v30 }
 0x1c5   : > { %v235_v32 = vpop.xlane.xlu1 %234 }
 0x1c6   : > { %v236_v33 = vadd.f32 %v235_v32, %v231_v31 }
 0x1c8   : > { %237 = vst.msk [vmem:[#allocation4] sm:$0xff] %vm185_vm0, %v236_v33 }
 0x1cb   : > { %v242_v34 = vld [vmem:[#allocation3] sm:$0xff] }
 0x1cc   : > { %446 = vlog2.f32 %v242_v34 }
 0x1cf   : > { %v246_v42 = vld [vmem:[#allocation4] sm:$0xff] }
 0x1d9   : > { %v447_v37 = vpop.eup %446 }
 0x1da   : > { %v244_v39 = vmul.f32 0.6931472, %v447_v37 }
 0x1dc   : > { %v245_v43 = vadd.f32 %v244_v39, %v241_v41 }
 0x1de   : > { %v247_v44 = vsub.f32 %v245_v43, %v246_v42 }
 0x1e0   : > { %v256_v45 = vsel %vm255_vm4, %v247_v44, 0.0 }
 0x1e1   : > { %v257_v46 = vsel %vm185_vm0, %v256_v45, 0.0 }
 0x1e2   : > { %258 = vadd.xlane.f32.xlu1 %v257_v46 }
 0x26b   : > { %v259_v47 = vpop.xlane.xlu1 %258 }
 0x26c   : > { %v260_v48 = vrot.slane %v259_v47, 4 }
 0x26e   : > { %v261_v49 = vadd.f32 %v260_v48, %v259_v47 }
 0x270   : > { %v262_v50 = vrot.slane %v261_v49, 2 }
 0x272   : > { %v263_v51 = vadd.f32 %v262_v50, %v261_v49 }
 0x274   : > { %v264_v52 = vrot.slane %v263_v51, 1 }
 0x276   : > { %v265_v53 = vadd.f32 %v264_v52, %v263_v51 }
 0x278   : > { %379 = vpush %v265_v53 }
 0x2a9   : > { %s380_s20 = spop %379 }
 0x2aa   : > { %s267_s22 = smul.f32 0.0009765625, %s380_s20 }
 0x2ac   : > { %v268_v54 = vstv %s267_s22 }
 0x2ad   : > { %269 = vst [vmem:[%s169_s12] sm:$0xff] %v268_v54 }
 0x2ae   : > { %461 = shalt.err (!%p458_p5)
}
 0x2af   : > { %s462_s6 = scalar_lea.hbm %s636_s28, 128  ;;  %s466_s9 = scalar_lea.hbm %s679_s3, 384 }
 0x2b0   : > { %p463_p6 = scmp.ne.s32.totalorder %s636_s28, %s462_s6  ;;  %p467_p10 = scmp.lt.s32.totalorder %s636_s28, %s679_s3 }
 0x2b1   : > { %p468_p11 = scmp.lt.s32.totalorder %s466_s9, %s462_s6 }
 0x2b2   : > { %p464_p7 = pnand %p463_p6, %p594_p4 }
 0x2b3   : > { %p469_p12 = por %p468_p11, %p467_p10 }
 0x2b4   : > { %p465_p9 = pneg %p464_p7 }
 0x2b6   : > { %p470_p13 = pnand %p469_p12, %p465_p9 }
 0x2b8   : > { %473 = shalt.err (!%p470_p13)
}
 0x2b9   : > { %381 = dma.vmem_to_hbm [thread:$0]  (%p594_p4), %s285_s13, 128, %s636_s28, %s271_s29  }
 0x2ba PF: > { %p387_p0 = scmp.ge.s32.totalorder %s524_s19, 2  ;;  %s296_s12 = sand.u32 1, %s504_s14  }
 0x2bb   : > { %s297_s0 = scalar_lea.sflag [#allocation8], %s296_s12 }
 0x2bc   : > { %p384_p1 = pnand %p387_p0, %p601_p8 }
 0x2be   : > { %p385_p2 = pneg %p384_p1 }
 0x2c0   : > { %499 = dma.done.wait (%p385_p2), %s297_s0, 128  }
 0x2c1   : > { %501 = vsyncadd (%p385_p2), %s297_s0, 4294967168  ;;  %s17_s19 = sadd.s32 1, %s524_s19   ;;  %s682_s14 = smov %s508_s15 }
 0x2c2   : > { %p14_p3 = scmp.ge.s32.totalorder %s17_s19, 5   ;;  %s683_s15 = smov %s512_s16 }
 0x2c3   : > { %s684_s16 = smov %s607_s26  ;;  %s685_s17 = smov %s520_s18 }
 0x2c4   : > { %s686_s18 = smov %s688_s21  ;;  %16 = sbr.rel (!%p14_p3) target bundleno = 6 (0x6), region = 74 }
 0x2c9   :  { %302 = vsyncpa [#allocation8], 1 }
 0x2ca   :  { %304 = vsyncpa [#allocation8 + $0x1], 1 }

</bundles_post_ra>
